<compile_context>
chip_gen: v7x
topology: tpu7x:2x2x1
jax: 0.10.0
libtpu: 0.0.40
codegen_flags: <defaults>
</compile_context>

<pallas_src>
import functools
import math

import jax
import jax.numpy as jnp
from jax.experimental import pallas as pl
from jax.experimental.pallas import tpu as pltpu

EPS = 1e-5            # nn.BatchNorm1d default eps
LANE = 128
SUBLANE_BF16 = 16     # bf16 sublane packing
MIN_PARALLEL_ROWS = 512   # below this, don't force a 2-step grid
OUT_DTYPE = jnp.bfloat16  # padded-logit dtype (halves output HBM traffic)


def _round_up(n, m):
    return ((n + m - 1) // m) * m


def _cdiv(a, b):
    return -(-a // b)


# ----------------------------- Pallas kernel --------------------------------

def mlp_kernel(x_ref,
               w1_ref, b1_ref,
               w2_ref, b2_ref,
               w3_ref, b3_ref,
               w4_ref, b4_ref,
               o_ref):
    """BN-folded MLP on one batch tile: 4x (bf16 matmul -> f32 bias -> ReLU)."""
    h = x_ref[...]                                                   # (TB, F_PAD) bf16

    h = jnp.dot(h, w1_ref[...], preferred_element_type=jnp.float32) + b1_ref[...]
    h = jnp.maximum(h, 0.0).astype(jnp.bfloat16)

    h = jnp.dot(h, w2_ref[...], preferred_element_type=jnp.float32) + b2_ref[...]
    h = jnp.maximum(h, 0.0).astype(jnp.bfloat16)
    # TODO(synk): training-mode Dropout(p=0.2) would use pltpu.prng_random_bits;
    #             eval-mode dropout is the identity, so nothing to do here.

    h = jnp.dot(h, w3_ref[...], preferred_element_type=jnp.float32) + b3_ref[...]
    h = jnp.maximum(h, 0.0).astype(jnp.bfloat16)
    # NOTE: relu-then-cast kept (v5e-safe); relu-in-bf16 is a small VALU win on
    # v6e/v7x only when VALU is the binding slot.

    o_ref[...] = (jnp.dot(h, w4_ref[...], preferred_element_type=jnp.float32)
                  + b4_ref[...]).astype(o_ref.dtype)


# ----------------------------- host-side prep --------------------------------

def fold_and_pad_params(params, num_feature, num_class):
    """Fold eval-mode BN into the Linears, pad F/h3/C, cast W to bf16."""
    (w1, b1, g1, be1, rm1, rv1,
     w2, b2, g2, be2, rm2, rv2,
     w3, b3, g3, be3, rm3, rv3,
     w4, b4) = params

    def fold(w, b, g, be, rm, rv):
        s = g * jax.lax.rsqrt(rv + EPS)               # (1, out)
        return w * s, (b - rm) * s + be

    w1f, b1f = fold(w1, b1, g1, be1, rm1, rv1)
    w2f, b2f = fold(w2, b2, g2, be2, rm2, rv2)
    w3f, b3f = fold(w3, b3, g3, be3, rm3, rv3)

    d3 = w3.shape[1]                                  # 64
    f_pad = _round_up(num_feature, SUBLANE_BF16)      # 16: keeps padded x tiny
    h3_pad = _round_up(d3, LANE)                      # 128: lane-dense h3
    c_pad = _round_up(num_class, LANE)                # 128: unmasked output stores

    # layer 1: zero-pad K (input features)
    w1f = jnp.pad(w1f, ((0, f_pad - num_feature), (0, 0)))
    # layer 3: zero-pad N; padded b3 entries MUST be zero so padded h3 stays 0
    w3f = jnp.pad(w3f, ((0, 0), (0, h3_pad - d3)))
    b3f = jnp.pad(b3f, ((0, 0), (0, h3_pad - d3)))
    # layer out: zero-pad K (matches h3 pad) and N (classes)
    w4p = jnp.pad(w4, ((0, h3_pad - d3), (0, c_pad - num_class)))
    b4p = jnp.pad(b4, ((0, 0), (0, c_pad - num_class)))

    bf16 = lambda a: a.astype(jnp.bfloat16)
    f32 = lambda a: a.astype(jnp.float32)
    return (bf16(w1f), f32(b1f),
            bf16(w2f), f32(b2f),
            bf16(w3f), f32(b3f),
            bf16(w4p), f32(b4p))


def _choose_tile(batch, tile_b):
    """Adaptive batch tile: multiple of 16, bounded padding waste, and a
    >=2-step grid when the batch is large enough to feed two TensorCores."""
    n_tiles = _cdiv(batch, tile_b)
    if batch >= MIN_PARALLEL_ROWS:
        n_tiles = max(n_tiles, 2)                     # v7x: both cores busy
    return _round_up(_cdiv(batch, n_tiles), SUBLANE_BF16)


@functools.partial(jax.jit, static_argnames=("num_class", "tile_b"))
def forward(x, folded_params, num_class, tile_b=2048):
    w1, b1, w2, b2, w3, b3, w4, b4 = folded_params
    batch, num_feature = x.shape
    f_pad = w1.shape[0]
    h1 = w1.shape[1]
    h2 = w2.shape[1]
    h3_pad = w3.shape[1]
    c_pad = w4.shape[1]

    tb = _choose_tile(batch, tile_b)
    b_pad = _round_up(batch, tb)
    grid = (b_pad // tb,)

    # TODO(synk): allow_input_fusion could fuse this pad+cast into the kernel's
    # operand DMA; with f_pad=16 the extra HBM pass is only ~32 B/row, so it is
    # left as a plain XLA op for robustness.
    xp = jnp.pad(x, ((0, b_pad - batch),
                     (0, f_pad - num_feature))).astype(jnp.bfloat16)

    resident = lambda i: (0, 0)
    flops = 2 * b_pad * (f_pad * h1 + h1 * h2 + h2 * h3_pad + h3_pad * c_pad)
    bytes_accessed = (int(xp.size) * 2 + b_pad * c_pad * OUT_DTYPE(0).itemsize +
                      sum(int(p.size) * p.dtype.itemsize for p in folded_params))

    out = pl.pallas_call(
        mlp_kernel,
        out_shape=jax.ShapeDtypeStruct((b_pad, c_pad), OUT_DTYPE),
        grid=grid,
        in_specs=[
            pl.BlockSpec((tb, f_pad), lambda i: (i, 0)),     # x batch tile
            pl.BlockSpec(w1.shape, resident), pl.BlockSpec(b1.shape, resident),
            pl.BlockSpec(w2.shape, resident), pl.BlockSpec(b2.shape, resident),
            pl.BlockSpec(w3.shape, resident), pl.BlockSpec(b3.shape, resident),
            pl.BlockSpec(w4.shape, resident), pl.BlockSpec(b4.shape, resident),
        ],
        out_specs=pl.BlockSpec((tb, c_pad), lambda i: (i, 0)),
        compiler_params=pltpu.CompilerParams(
            dimension_semantics=("parallel",)),
        cost_estimate=pl.CostEstimate(flops=flops, transcendentals=0,
                                      bytes_accessed=bytes_accessed),
    )(xp, w1, b1, w2, b2, w3, b3, w4, b4)

    # bfloat16 padded logits: ~3 decimal digits less than f32 (fine for
    # argmax / softmax); cast here if a consumer needs f32.
    return out[:batch, :num_class]


# ----------------------------- references & init -----------------------------

def _bn(h, gamma, beta, rmean, rvar):
    return (h - rmean) * jax.lax.rsqrt(rvar + EPS) * gamma + beta


def reference_f32(x, params):
    """Full-precision reference of the original (unfolded) module, eval mode."""
    (w1, b1, g1, be1, rm1, rv1,
     w2, b2, g2, be2, rm2, rv2,
     w3, b3, g3, be3, rm3, rv3,
     w4, b4) = params
    h = jnp.maximum(_bn(x @ w1 + b1, g1, be1, rm1, rv1), 0.0)
    h = jnp.maximum(_bn(h @ w2 + b2, g2, be2, rm2, rv2), 0.0)
    h = jnp.maximum(_bn(h @ w3 + b3, g3, be3, rm3, rv3), 0.0)
    return h @ w4 + b4


def reference_folded_bf16(x, folded, num_feature, num_class):
    """Pure-JAX emulation of the kernel's bf16/f32-accum math (tight check)."""
    w1, b1, w2, b2, w3, b3, w4, b4 = folded
    f_pad = w1.shape[0]
    h = jnp.pad(x, ((0, 0), (0, f_pad - num_feature))).astype(jnp.bfloat16)
    h = jnp.maximum(jnp.dot(h, w1, preferred_element_type=jnp.float32) + b1, 0.0)
    h = jnp.maximum(jnp.dot(h.astype(jnp.bfloat16), w2,
                            preferred_element_type=jnp.float32) + b2, 0.0)
    h = jnp.maximum(jnp.dot(h.astype(jnp.bfloat16), w3,
                            preferred_element_type=jnp.float32) + b3, 0.0)
    out = (jnp.dot(h.astype(jnp.bfloat16), w4,
                   preferred_element_type=jnp.float32) + b4).astype(OUT_DTYPE)
    return out[:, :num_class]


def init_params(key, num_feature, num_class):
    """Deterministic PyTorch-style init (Linear: U(-1/sqrt(fan_in), ..))."""
    dims = [num_feature, 512, 128, 64, num_class]
    params = []
    keys = jax.random.split(key, 32)
    ki = 0

    def linear(fan_in, fan_out):
        nonlocal ki
        bound = 1.0 / math.sqrt(fan_in)
        # torch stores (out,in); pre-transposed to (in,out) for x @ W.
        w = jax.random.uniform(keys[ki], (fan_in, fan_out), jnp.float32,
                               -bound, bound); ki += 1
        b = jax.random.uniform(keys[ki], (1, fan_out), jnp.float32,
                               -bound, bound); ki += 1
        return w, b

    def bnorm(feat):
        nonlocal ki
        gamma = 1.0 + 0.1 * jax.random.normal(keys[ki], (1, feat), jnp.float32); ki += 1
        beta = 0.1 * jax.random.normal(keys[ki], (1, feat), jnp.float32); ki += 1
        rmean = 0.1 * jax.random.normal(keys[ki], (1, feat), jnp.float32); ki += 1
        rvar = jax.random.uniform(keys[ki], (1, feat), jnp.float32, 0.5, 1.5); ki += 1
        return gamma, beta, rmean, rvar

    for li in range(4):
        w, b = linear(dims[li], dims[li + 1])
        params.extend([w, b])
        if li < 3:  # batchnorm after layers 1..3 only
            params.extend(bnorm(dims[li + 1]))
    return tuple(params)


if __name__ == "__main__":
    num_feature = 11   # wine dataset features
    num_class = 6

    key = jax.random.PRNGKey(0)
    k_x, k_p, k_x2 = jax.random.split(key, 3)
    params = init_params(k_p, num_feature, num_class)
    folded = fold_and_pad_params(params, num_feature, num_class)

    # --- small batch (single grid step) ---
    batch = 16
    x = jax.random.normal(k_x, (batch, num_feature), jnp.float32)
    out = forward(x, folded, num_class=num_class)
    jax.block_until_ready(out)
    assert out.shape == (batch, num_class)

    # Tight check against the exact bf16-folded math the kernel implements.
    ref_b = reference_folded_bf16(x, folded, num_feature, num_class)
    assert jnp.allclose(out.astype(jnp.float32), ref_b.astype(jnp.float32),
                        atol=2e-2, rtol=2e-2), \
        float(jnp.max(jnp.abs(out.astype(jnp.float32) - ref_b.astype(jnp.float32))))

    # Loose end-to-end check against the full-precision unfolded module
    # (bf16 weights + bf16 logits => ~1e-2 absolute drift expected).
    ref_f = reference_f32(x, params)
    assert jnp.allclose(out.astype(jnp.float32), ref_f, atol=1.5e-1, rtol=1.5e-1), \
        float(jnp.max(jnp.abs(out.astype(jnp.float32) - ref_f)))

    # --- larger batch (adaptive tile, 2-step parallel grid) ---
    batch2 = 600
    x2 = jax.random.normal(k_x2, (batch2, num_feature), jnp.float32)
    out2 = forward(x2, folded, num_class=num_class)
    jax.block_until_ready(out2)
    assert out2.shape == (batch2, num_class)
    ref_b2 = reference_folded_bf16(x2, folded, num_feature, num_class)
    assert jnp.allclose(out2.astype(jnp.float32), ref_b2.astype(jnp.float32),
                        atol=2e-2, rtol=2e-2), \
        float(jnp.max(jnp.abs(out2.astype(jnp.float32) - ref_b2.astype(jnp.float32))))

    print("KERNEL_OK")
</pallas_src>

<mosaic_0001>
module attributes {stable_mosaic.version = 11 : i64} {
  func.func @mlp_kernel(%arg0: i32, %arg1: memref<16x16xbf16, #tpu.memory_space<vmem>>, %arg2: memref<16x512xbf16, #tpu.memory_space<vmem>>, %arg3: memref<1x512xf32, #tpu.memory_space<vmem>>, %arg4: memref<512x128xbf16, #tpu.memory_space<vmem>>, %arg5: memref<1x128xf32, #tpu.memory_space<vmem>>, %arg6: memref<128x128xbf16, #tpu.memory_space<vmem>>, %arg7: memref<1x128xf32, #tpu.memory_space<vmem>>, %arg8: memref<128x128xbf16, #tpu.memory_space<vmem>>, %arg9: memref<1x128xf32, #tpu.memory_space<vmem>>, %arg10: memref<16x128xbf16, #tpu.memory_space<vmem>>) attributes {dimension_semantics = [#tpu.dimension_semantics<parallel>], iteration_bounds = array<i64: 1>, scalar_prefetch = 0 : i64, scratch_operands = 0 : i64, tpu.core_type = #tpu.core_type<tc>, window_params = [{transform_indices = @transform_0, window_bounds = array<i64: 16, 16>}, {pipeline_mode = #tpu.pipeline_mode<synchronous>, transform_indices = @transform_1, window_bounds = array<i64: 16, 512>}, {pipeline_mode = #tpu.pipeline_mode<synchronous>, transform_indices = @transform_2, window_bounds = array<i64: 1, 512>}, {pipeline_mode = #tpu.pipeline_mode<synchronous>, transform_indices = @transform_3, window_bounds = array<i64: 512, 128>}, {pipeline_mode = #tpu.pipeline_mode<synchronous>, transform_indices = @transform_4, window_bounds = array<i64: 1, 128>}, {pipeline_mode = #tpu.pipeline_mode<synchronous>, transform_indices = @transform_5, window_bounds = array<i64: 128, 128>}, {pipeline_mode = #tpu.pipeline_mode<synchronous>, transform_indices = @transform_6, window_bounds = array<i64: 1, 128>}, {pipeline_mode = #tpu.pipeline_mode<synchronous>, transform_indices = @transform_7, window_bounds = array<i64: 128, 128>}, {pipeline_mode = #tpu.pipeline_mode<synchronous>, transform_indices = @transform_8, window_bounds = array<i64: 1, 128>}, {transform_indices = @transform_9, window_bounds = array<i64: 16, 128>}]} {
    %c0 = arith.constant 0 : index
    %c0_0 = arith.constant 0 : index
    %0 = vector.load %arg1[%c0, %c0_0] : memref<16x16xbf16, #tpu.memory_space<vmem>>, vector<16x16xbf16>
    %c0_1 = arith.constant 0 : index
    %c0_2 = arith.constant 0 : index
    %1 = vector.load %arg2[%c0_1, %c0_2] : memref<16x512xbf16, #tpu.memory_space<vmem>>, vector<16x512xbf16>
    %cst = arith.constant dense<0.000000e+00> : vector<16x512xf32>
    %2 = tpu.matmul %0, %1, %cst {dimension_numbers = #tpu.dot_dimension_numbers<[1], [0], [0], [1], [0, 0, 1, 1], [], []>} : vector<16x16xbf16>, vector<16x512xbf16>, vector<16x512xf32> -> vector<16x512xf32>
    %c0_3 = arith.constant 0 : index
    %c0_4 = arith.constant 0 : index
    %3 = vector.load %arg3[%c0_3, %c0_4] : memref<1x512xf32, #tpu.memory_space<vmem>>, vector<1x512xf32>
    %4 = vector.broadcast %3 : vector<1x512xf32> to vector<16x512xf32>
    %5 = arith.addf %2, %4 : vector<16x512xf32>
    %cst_5 = arith.constant 0.000000e+00 : f32
    %6 = vector.broadcast %cst_5 : f32 to vector<16x512xf32>
    %7 = arith.maximumf %5, %6 : vector<16x512xf32>
    %8 = arith.truncf %7 : vector<16x512xf32> to vector<16x512xbf16>
    %c0_6 = arith.constant 0 : index
    %c0_7 = arith.constant 0 : index
    %9 = vector.load %arg4[%c0_6, %c0_7] : memref<512x128xbf16, #tpu.memory_space<vmem>>, vector<512x128xbf16>
    %cst_8 = arith.constant dense<0.000000e+00> : vector<16x128xf32>
    %10 = tpu.matmul %8, %9, %cst_8 {dimension_numbers = #tpu.dot_dimension_numbers<[1], [0], [0], [1], [0, 0, 1, 1], [], []>} : vector<16x512xbf16>, vector<512x128xbf16>, vector<16x128xf32> -> vector<16x128xf32>
    %c0_9 = arith.constant 0 : index
    %c0_10 = arith.constant 0 : index
    %11 = vector.load %arg5[%c0_9, %c0_10] : memref<1x128xf32, #tpu.memory_space<vmem>>, vector<1x128xf32>
    %12 = vector.broadcast %11 : vector<1x128xf32> to vector<16x128xf32>
    %13 = arith.addf %10, %12 : vector<16x128xf32>
    %cst_11 = arith.constant 0.000000e+00 : f32
    %14 = vector.broadcast %cst_11 : f32 to vector<16x128xf32>
    %15 = arith.maximumf %13, %14 : vector<16x128xf32>
    %16 = arith.truncf %15 : vector<16x128xf32> to vector<16x128xbf16>
    %c0_12 = arith.constant 0 : index
    %c0_13 = arith.constant 0 : index
    %17 = vector.load %arg6[%c0_12, %c0_13] : memref<128x128xbf16, #tpu.memory_space<vmem>>, vector<128x128xbf16>
    %cst_14 = arith.constant dense<0.000000e+00> : vector<16x128xf32>
    %18 = tpu.matmul %16, %17, %cst_14 {dimension_numbers = #tpu.dot_dimension_numbers<[1], [0], [0], [1], [0, 0, 1, 1], [], []>} : vector<16x128xbf16>, vector<128x128xbf16>, vector<16x128xf32> -> vector<16x128xf32>
    %c0_15 = arith.constant 0 : index
    %c0_16 = arith.constant 0 : index
    %19 = vector.load %arg7[%c0_15, %c0_16] : memref<1x128xf32, #tpu.memory_space<vmem>>, vector<1x128xf32>
    %20 = vector.broadcast %19 : vector<1x128xf32> to vector<16x128xf32>
    %21 = arith.addf %18, %20 : vector<16x128xf32>
    %cst_17 = arith.constant 0.000000e+00 : f32
    %22 = vector.broadcast %cst_17 : f32 to vector<16x128xf32>
    %23 = arith.maximumf %21, %22 : vector<16x128xf32>
    %24 = arith.truncf %23 : vector<16x128xf32> to vector<16x128xbf16>
    %c0_18 = arith.constant 0 : index
    %c0_19 = arith.constant 0 : index
    %25 = vector.load %arg8[%c0_18, %c0_19] : memref<128x128xbf16, #tpu.memory_space<vmem>>, vector<128x128xbf16>
    %cst_20 = arith.constant dense<0.000000e+00> : vector<16x128xf32>
    %26 = tpu.matmul %24, %25, %cst_20 {dimension_numbers = #tpu.dot_dimension_numbers<[1], [0], [0], [1], [0, 0, 1, 1], [], []>} : vector<16x128xbf16>, vector<128x128xbf16>, vector<16x128xf32> -> vector<16x128xf32>
    %c0_21 = arith.constant 0 : index
    %c0_22 = arith.constant 0 : index
    %27 = vector.load %arg9[%c0_21, %c0_22] : memref<1x128xf32, #tpu.memory_space<vmem>>, vector<1x128xf32>
    %28 = vector.broadcast %27 : vector<1x128xf32> to vector<16x128xf32>
    %29 = arith.addf %26, %28 : vector<16x128xf32>
    %30 = arith.truncf %29 : vector<16x128xf32> to vector<16x128xbf16>
    %c0_23 = arith.constant 0 : index
    %c0_24 = arith.constant 0 : index
    %31 = vector.load %arg10[%c0_23, %c0_24] : memref<16x128xbf16, #tpu.memory_space<vmem>>, vector<16x128xbf16>
    tpu.vector_store %arg10[%c0_23, %c0_24], %30 {strides = array<i32>} : memref<16x128xbf16, #tpu.memory_space<vmem>>, vector<16x128xbf16>,
    return
  }
  func.func @transform_0(%arg0: i32) -> (i32, i32) {
    %c0_i32 = arith.constant 0 : i32
    %c0_i32_0 = arith.constant 0 : i32
    return %arg0, %c0_i32 : i32, i32
  }
  func.func @transform_1(%arg0: i32) -> (i32, i32) {
    %c0_i32 = arith.constant 0 : i32
    %c0_i32_0 = arith.constant 0 : i32
    %c0_i32_1 = arith.constant 0 : i32
    return %c0_i32, %c0_i32_0 : i32, i32
  }
  func.func @transform_2(%arg0: i32) -> (i32, i32) {
    %c0_i32 = arith.constant 0 : i32
    %c0_i32_0 = arith.constant 0 : i32
    %c0_i32_1 = arith.constant 0 : i32
    return %c0_i32, %c0_i32_0 : i32, i32
  }
  func.func @transform_3(%arg0: i32) -> (i32, i32) {
    %c0_i32 = arith.constant 0 : i32
    %c0_i32_0 = arith.constant 0 : i32
    %c0_i32_1 = arith.constant 0 : i32
    return %c0_i32, %c0_i32_0 : i32, i32
  }
  func.func @transform_4(%arg0: i32) -> (i32, i32) {
    %c0_i32 = arith.constant 0 : i32
    %c0_i32_0 = arith.constant 0 : i32
    %c0_i32_1 = arith.constant 0 : i32
    return %c0_i32, %c0_i32_0 : i32, i32
  }
  func.func @transform_5(%arg0: i32) -> (i32, i32) {
    %c0_i32 = arith.constant 0 : i32
    %c0_i32_0 = arith.constant 0 : i32
    %c0_i32_1 = arith.constant 0 : i32
    return %c0_i32, %c0_i32_0 : i32, i32
  }
  func.func @transform_6(%arg0: i32) -> (i32, i32) {
    %c0_i32 = arith.constant 0 : i32
    %c0_i32_0 = arith.constant 0 : i32
    %c0_i32_1 = arith.constant 0 : i32
    return %c0_i32, %c0_i32_0 : i32, i32
  }
  func.func @transform_7(%arg0: i32) -> (i32, i32) {
    %c0_i32 = arith.constant 0 : i32
    %c0_i32_0 = arith.constant 0 : i32
    %c0_i32_1 = arith.constant 0 : i32
    return %c0_i32, %c0_i32_0 : i32, i32
  }
  func.func @transform_8(%arg0: i32) -> (i32, i32) {
    %c0_i32 = arith.constant 0 : i32
    %c0_i32_0 = arith.constant 0 : i32
    %c0_i32_1 = arith.constant 0 : i32
    return %c0_i32, %c0_i32_0 : i32, i32
  }
  func.func @transform_9(%arg0: i32) -> (i32, i32) {
    %c0_i32 = arith.constant 0 : i32
    %c0_i32_0 = arith.constant 0 : i32
    return %arg0, %c0_i32 : i32, i32
  }
}

</mosaic_0001>

<bundles_post_ra>
// kernel: forward.1
= control target key start
LH: loop header
LB: loop body
LE: loop exit
PB: predicated region body
PF: predicated region fallthrough
CT: control target
= control target key end

     0   :  { %14 = vsyncpa [#allocation3], 0  ;;  %s1335_s0 = inlined_call_operand.vmem [shape: bf16[16,16], index: 0, kind: input, shape index: {}]   ;;  %s1336_s1 = inlined_call_operand.hbm [shape: bf16[16,512], index: 1, kind: input, shape index: {}]   ;;  %s1337_s2 = inlined_call_operand.hbm [shape: f32[1,512], index: 2, kind: input, shape index: {}]   ;;  %s1338_s3 = inlined_call_operand.hbm [shape: bf16[512,128], index: 3, kind: input, shape index: {}]   ;;  %s1339_s4 = inlined_call_operand.vmem [shape: f32[1,128], index: 4, kind: input, shape index: {}]   ;;  %s1340_s5 = inlined_call_operand.hbm [shape: bf16[128,128], index: 5, kind: input, shape index: {}]   ;;  %s1341_s6 = inlined_call_operand.vmem [shape: f32[1,128], index: 6, kind: input, shape index: {}]   ;;  %s1342_s7 = inlined_call_operand.vmem [shape: bf16[128,128], index: 7, kind: input, shape index: {}]   ;;  %s1343_s8 = inlined_call_operand.vmem [shape: f32[1,128], index: 8, kind: input, shape index: {}]   ;;  %s1344_s9 = inlined_call_operand.vmem [shape: bf16[16,128], index: 9, kind: output, shape index: {}]  }
   0x1   :  { %15 = vsyncpa [#allocation5], 0 }
   0x2   :  { %16 = vsyncpa [#allocation8], 0  ;;  %s1162_s30 = smov [#allocation4]   ;;  %s1163_s11 = smov [#allocation2]  }
   0x3   :  { %s37_s10 = sshll.u32 %s1162_s30, 4  ;;  %s24_s12 = sshll.u32 %s1163_s11, 4  ;;  %s38_s10 = int_to_ptr.vmem [resolvable:$true] %s37_s10  ;;  %s1223_s12 = int_to_ptr.vmem [resolvable:$true] %s24_s12 }
   0x4   :  { %s1068_s15 = scalar_lea.hbm %s1337_s2, 64 }
   0x5   :  { %p1069_p0 = scmp.ne.s32.totalorder %s1337_s2, %s1068_s15  ;;  %p1072_p1 = scmp.lt.u32.totalorder %s1068_s15, %s1337_s2 }
   0x7   :  { %p1074_p2 = pnand %p1072_p1, %p1069_p0 }
   0x9   :  { %1077 = shalt.err (!%p1074_p2)
}
   0xa   :  { %s1078_s20 = scalar_lea.vmem %s38_s10, 64  ;;  %p1083_p4 = scmp.lt.s32.totalorder %s38_s10, %s38_s10 }
   0xb   :  { %p1079_p3 = scmp.ne.s32.totalorder %s38_s10, %s1078_s20  ;;  %p1084_p5 = scmp.lt.s32.totalorder %s1078_s20, %s1078_s20 }
   0xd   :  { %p1085_p6 = por %p1084_p5, %p1083_p4 }
   0xf   :  { %p1086_p7 = pnand %p1085_p6, %p1079_p3 }
  0x11   :  { %1089 = shalt.err (!%p1086_p7)
}
  0x12   :  { %40 = dma.hbm_to_vmem [thread:$0]  %s1337_s2, 64, %s38_s10, [#allocation5]  }
  0x13   :  { %s1090_s25 = scalar_lea.hbm %s1336_s1, 512 }
  0x14   :  { %p1091_p8 = scmp.ne.s32.totalorder %s1336_s1, %s1090_s25  ;;  %p1094_p9 = scmp.lt.u32.totalorder %s1090_s25, %s1336_s1 }
  0x16   :  { %p1096_p10 = pnand %p1094_p9, %p1091_p8 }
  0x18   :  { %1099 = shalt.err (!%p1096_p10)
}
  0x19   :  { %s1100_s30 = scalar_lea.vmem %s1223_s12, 512  ;;  %p1105_p12 = scmp.lt.s32.totalorder %s1223_s12, %s1223_s12 }
  0x1a   :  { %p1101_p11 = scmp.ne.s32.totalorder %s1223_s12, %s1100_s30  ;;  %p1106_p13 = scmp.lt.s32.totalorder %s1100_s30, %s1100_s30 }
  0x1c   :  { %p1107_p0 = por %p1106_p13, %p1105_p12 }
  0x1e   :  { %p1108_p1 = pnand %p1107_p0, %p1101_p11 }
  0x20   :  { %1111 = shalt.err (!%p1108_p1)
}
  0x21   :  { %s1164_s2 = smov 256   ;;  %s1165_s10 = smov 16  }
  0x22   :  { %30 = dma.hbm_to_vmem [thread:$0]  %s1336_s1, 512, %s1223_s12, [#allocation3], %s1164_s2, %s1164_s2, %s1165_s10  }
  0x23   :  { %s1166_s14 = smov [#allocation6]   ;;  %s1112_s18 = scalar_lea.hbm %s1338_s3, 4096 }
  0x24   :  { %s46_s15 = sshll.u32 %s1166_s14, 4  ;;  %p1113_p2 = scmp.ne.s32.totalorder %s1338_s3, %s1112_s18  ;;  %s47_s15 = int_to_ptr.vmem [resolvable:$true] %s46_s15 }
  0x25   :  { %p1116_p3 = scmp.lt.u32.totalorder %s1112_s18, %s1338_s3 }
  0x27   :  { %p1118_p4 = pnand %p1116_p3, %p1113_p2 }
  0x29   :  { %1121 = shalt.err (!%p1118_p4)
}
  0x2a   :  { %s1122_s23 = scalar_lea.vmem %s47_s15, 4096  ;;  %p1127_p6 = scmp.lt.s32.totalorder %s47_s15, %s47_s15 }
  0x2b   :  { %p1123_p5 = scmp.ne.s32.totalorder %s47_s15, %s1122_s23  ;;  %p1128_p7 = scmp.lt.s32.totalorder %s1122_s23, %s1122_s23 }
  0x2d   :  { %p1129_p8 = por %p1128_p7, %p1127_p6 }
  0x2f   :  { %p1130_p9 = pnand %p1129_p8, %p1123_p5 }
  0x31   :  { %1133 = shalt.err (!%p1130_p9)
}
  0x32   :  { %s1167_s1 = smov 64   ;;  %s1168_s12 = smov 4  }
  0x33   :  { %52 = dma.hbm_to_vmem [thread:$0]  %s1338_s3, 4096, %s47_s15, [#allocation5], %s1167_s1, %s1167_s1, %s1168_s12  }
  0x34   :  { %s1169_s26 = smov [#allocation7]   ;;  %s1134_s30 = scalar_lea.hbm %s1340_s5, 1024 }
  0x35   :  { %s60_s27 = sshll.u32 %s1169_s26, 4  ;;  %p1135_p10 = scmp.ne.s32.totalorder %s1340_s5, %s1134_s30  ;;  %s61_s27 = int_to_ptr.vmem [resolvable:$true] %s60_s27 }
  0x36   :  { %p1138_p11 = scmp.lt.u32.totalorder %s1134_s30, %s1340_s5 }
  0x38   :  { %p1140_p12 = pnand %p1138_p11, %p1135_p10 }
  0x3a   :  { %1143 = shalt.err (!%p1140_p12)
}
  0x3b   :  { %s1144_s14 = scalar_lea.vmem %s61_s27, 1024  ;;  %p1149_p0 = scmp.lt.s32.totalorder %s61_s27, %s61_s27 }
  0x3c   :  { %p1145_p13 = scmp.ne.s32.totalorder %s61_s27, %s1144_s14  ;;  %p1150_p1 = scmp.lt.s32.totalorder %s1144_s14, %s1144_s14 }
  0x3e   :  { %p1151_p2 = por %p1150_p1, %p1149_p0 }
  0x40   :  { %p1152_p3 = pnand %p1151_p2, %p1145_p13 }
  0x42   :  { %1155 = shalt.err (!%p1152_p3)
}
  0x43   :  { %66 = dma.hbm_to_vmem [thread:$0]  %s1340_s5, 1024, %s61_s27, [#allocation8], %s1167_s1, %s1167_s1, %s1168_s12  }
  0x44   :  { %1156 = dma.done.wait [#allocation3], 512  }
  0x45   :  { %1157 = vsyncadd [#allocation3], 4294966784 }
  0x46   :  { %1158 = dma.done.wait [#allocation5], 4160  }
  0x47   :  { %1159 = vsyncadd [#allocation5], 4294963136 }
  0x48   :  { %1160 = dma.done.wait [#allocation8], 1024  }
  0x49   :  { %1161 = vsyncadd [#allocation8], 4294966272  ;;  %v1170_v0 = vmov 0   ;;  %v1013_v1 = vld [vmem:[#allocation2 + $0x4] ss:$16 sps:$4 sm:$0xff]   ;;  %vm139_vm0 = vcmask 130048   ;;  %v94_v39 = vlaneseq }
  0x4a   :  { %175 = vmatprep.mubr.bf16.mxu0 %v1170_v0  ;;  %218 = vmatprep.mubr.bf16.mxu1 %v1170_v0  ;;  %v1015_v2 = vld [vmem:[#allocation2 + $0xc] ss:$16 sps:$4 sm:$0xff]   ;;  %v1017_v3 = vld [vmem:[#allocation2] ss:$16 sps:$4 sm:$0xff]   ;;  %v1018_v4 = vld [vmem:[#allocation2 + $0x8] ss:$16 sps:$4 sm:$0xff]  }
  0x4b   :  { %143 = vmatprep.subr.bf16.mxu0 %v1013_v1  ;;  %186 = vmatprep.subr.bf16.mxu1 %v1015_v2  ;;  %v1019_v5 = vld [vmem:[%s1335_s0] sm:$0xff]   ;;  %v1024_v10 = vld [vmem:[#allocation6 + $0x48] sm:$0xff]   ;;  %v1028_v14 = vld [vmem:[#allocation6 + $0x50] sm:$0xff]   ;;  %v1171_v38 = vmov 0.0   ;;  %v95_v40 = vshrl.u32 %v94_v39, 7  ;;  %vm1172_vm1 = vmmov 0  }
  0x4c   :  { %144 = vmatpush1.bf16.msra.mxu0 %v1017_v3  ;;  %187 = vmatpush1.bf16.msra.mxu1 %v1018_v4  ;;  %v1020_v6 = vld [vmem:[#allocation6 + $0x40] sm:$0xff]   ;;  %v1025_v11 = vld [vmem:[#allocation6 + $0xc8] sm:$0xff]   ;;  %v1029_v15 = vld [vmem:[#allocation6 + $0xd0] sm:$0xff]  }
  0x4d   :  { %v1021_v7 = vld [vmem:[#allocation6 + $0xc0] sm:$0xff]   ;;  %900 = vmatprep.subr.bf16.mxu0 %v1020_v6  ;;  %v1026_v12 = vld [vmem:[#allocation6 + $0x8] sm:$0xff]   ;;  %v1030_v16 = vld [vmem:[#allocation6 + $0x10] sm:$0xff]   ;;  %v96_v41 = vsub.s32 0, %v95_v40  ;;  %v104_v42 = vsub.s32 2, %v95_v40  ;;  %v100_v44 = vsub.s32 1, %v95_v40 }
  0x4e   :  { %v1022_v8 = vld [vmem:[#allocation6] sm:$0xff]   ;;  %922 = vmatprep.subr.bf16.mxu1 %v1021_v7  ;;  %v1027_v13 = vld [vmem:[#allocation6 + $0x88] sm:$0xff]   ;;  %v1031_v17 = vld [vmem:[#allocation6 + $0x90] sm:$0xff]   ;;  %v108_v45 = vsub.s32 3, %v95_v40 }
  0x4f   :  { %838 = vmatmul.mubr.msk.bf16.vlgmr.msra.gmra.mrb[0].mxu0 %vm139_vm0, %v1019_v5  ;;  %839 = vmatmul.mubr.msk.bf16.vlgmr.msra.gmra.mrb[0].mxu1 %vm139_vm0, %v1019_v5  ;;  %v1023_v9 = vld [vmem:[#allocation6 + $0x80] sm:$0xff]   ;;  %v1032_v18 = vld [vmem:[#allocation6 + $0x58] sm:$0xff]   ;;  %v1040_v26 = vld [vmem:[#allocation6 + $0x68] sm:$0xff]  }
  0x50   :  { %901 = vmatpush3.bf16.msra.mxu0 %v1022_v8  ;;  %923 = vmatpush3.bf16.msra.mxu1 %v1023_v9  ;;  %v1033_v19 = vld [vmem:[#allocation6 + $0xd8] sm:$0xff]   ;;  %v1036_v22 = vld [vmem:[#allocation6 + $0x60] sm:$0xff]   ;;  %v1041_v27 = vld [vmem:[#allocation6 + $0xe8] sm:$0xff]  }
  0x51   :  { %902 = vmatprep.subr.bf16.mxu0 %v1024_v10  ;;  %924 = vmatprep.subr.bf16.mxu1 %v1025_v11  ;;  %v1034_v20 = vld [vmem:[#allocation6 + $0x18] sm:$0xff]   ;;  %v1037_v23 = vld [vmem:[#allocation6 + $0xe0] sm:$0xff]   ;;  %v1042_v28 = vld [vmem:[#allocation6 + $0x28] sm:$0xff]  }
  0x52   :  { %v1035_v21 = vld [vmem:[#allocation6 + $0x98] sm:$0xff]   ;;  %v1038_v24 = vld [vmem:[#allocation6 + $0x20] sm:$0xff]   ;;  %v1043_v29 = vld [vmem:[#allocation6 + $0xa8] sm:$0xff]  }
  0x53   :  { %v1039_v25 = vld [vmem:[#allocation6 + $0xa0] sm:$0xff]   ;;  %v1044_v30 = vld [vmem:[#allocation6 + $0x70] sm:$0xff]   ;;  %v1048_v34 = vld [vmem:[#allocation6 + $0x78] sm:$0xff]  }
  0x54   :  { %903 = vmatpush3.bf16.msra.mxu0 %v1026_v12  ;;  %925 = vmatpush3.bf16.msra.mxu1 %v1027_v13  ;;  %v1045_v31 = vld [vmem:[#allocation6 + $0xf0] sm:$0xff]   ;;  %v1049_v35 = vld [vmem:[#allocation6 + $0xf8] sm:$0xff]  }
  0x55   :  { %904 = vmatprep.subr.bf16.mxu0 %v1028_v14  ;;  %926 = vmatprep.subr.bf16.mxu1 %v1029_v15  ;;  %v1046_v32 = vld [vmem:[#allocation6 + $0x30] sm:$0xff]   ;;  %v1050_v36 = vld [vmem:[#allocation6 + $0x38] sm:$0xff]   ;;  %v1052_v14 = vld [vmem:[#allocation7] sm:$0xff]  }
  0x56   :  { %v1047_v33 = vld [vmem:[#allocation6 + $0xb0] sm:$0xff]   ;;  %v1051_v37 = vld [vmem:[#allocation6 + $0xb8] sm:$0xff]   ;;  %v1053_v15 = vld [vmem:[#allocation7 + $0x8] sm:$0xff]  }
  0x57   :  { %v92_v43 = vld [vmem:[#allocation4] sm:$0xf] }
  0x58   :  { %905 = vmatpush3.bf16.msra.mxu0 %v1030_v16  ;;  %927 = vmatpush3.bf16.msra.mxu1 %v1031_v17  ;;  %v97_v46 = vrot.slane %v92_v43, %v96_v41  ;;  %v105_v47 = vrot.slane %v92_v43, %v104_v42  ;;  %v101_v48 = vrot.slane %v92_v43, %v100_v44  ;;  %v1054_v16 = vld [vmem:[#allocation7 + $0x10] sm:$0xff]   ;;  %v1055_v17 = vld [vmem:[#allocation7 + $0x18] sm:$0xff]  }
  0x59   :  { %906 = vmatprep.subr.bf16.mxu0 %v1032_v18  ;;  %928 = vmatprep.subr.bf16.mxu1 %v1033_v19  ;;  %v109_v49 = vrot.slane %v92_v43, %v108_v45  ;;  %v1056_v18 = vld [vmem:[#allocation7 + $0x20] sm:$0xff]   ;;  %v1057_v19 = vld [vmem:[#allocation7 + $0x28] sm:$0xff]  }
  0x5c   :  { %907 = vmatpush3.bf16.msra.mxu0 %v1034_v20  ;;  %929 = vmatpush3.bf16.msra.mxu1 %v1035_v21  ;;  %v1058_v20 = vld [vmem:[#allocation7 + $0x30] sm:$0xff]   ;;  %v1059_v21 = vld [vmem:[#allocation7 + $0x38] sm:$0xff]  }
  0x5d   :  { %908 = vmatprep.subr.bf16.mxu0 %v1036_v22  ;;  %930 = vmatprep.subr.bf16.mxu1 %v1037_v23  ;;  %v1060_v22 = vld [vmem:[%s1342_s7] sm:$0xff]   ;;  %v1061_v23 = vld [vmem:[%s1342_s7 + $0x8] sm:$0xff]  }
  0x60   :  { %909 = vmatpush3.bf16.msra.mxu0 %v1038_v24  ;;  %931 = vmatpush3.bf16.msra.mxu1 %v1039_v25  ;;  %v1062_v24 = vld [vmem:[%s1342_s7 + $0x10] sm:$0xff]   ;;  %v1063_v25 = vld [vmem:[%s1342_s7 + $0x18] sm:$0xff]  }
  0x61   :  { %910 = vmatprep.subr.bf16.mxu0 %v1040_v26  ;;  %932 = vmatprep.subr.bf16.mxu1 %v1041_v27  ;;  %v1064_v26 = vld [vmem:[%s1342_s7 + $0x20] sm:$0xff]   ;;  %v1065_v27 = vld [vmem:[%s1342_s7 + $0x28] sm:$0xff]  }
  0x64   :  { %911 = vmatpush3.bf16.msra.mxu0 %v1042_v28  ;;  %933 = vmatpush3.bf16.msra.mxu1 %v1043_v29 }
  0x65   :  { %912 = vmatprep.subr.bf16.mxu0 %v1044_v30  ;;  %934 = vmatprep.subr.bf16.mxu1 %v1045_v31  ;;  %v840_v30 = vld [vmem:[%s1339_s4] ss:$0 sm:$0xff] }
  0x68   :  { %913 = vmatpush3.bf16.msra.mxu0 %v1046_v32  ;;  %935 = vmatpush3.bf16.msra.mxu1 %v1047_v33 }
  0x69   :  { %914 = vmatprep.subr.bf16.mxu0 %v1048_v34  ;;  %936 = vmatprep.subr.bf16.mxu1 %v1049_v35 }
  0x6c   :  { %915 = vmatpush3.bf16.msra.mxu0 %v1050_v36  ;;  %937 = vmatpush3.bf16.msra.mxu1 %v1051_v37 }
  0x6d   :  { %962 = vmatprep.subr.bf16.mxu0 %v1171_v38  ;;  %982 = vmatprep.subr.bf16.mxu1 %v1171_v38 }
 0x122   :  { %v177_v50 = vpop.f32.mrb[0].mxu0  ;;  %v220_v51 = vpop.f32.mrb[0].mxu1 }
 0x123   :  { %v178_v52 = vadd.f32 %v177_v50, %v97_v46  ;;  %v221_v53 = vadd.f32 %v220_v51, %v105_v47  ;;  %v179_v54 = vpop.f32.mrb[1].mxu0  ;;  %v222_v55 = vpop.f32.mrb[1].mxu1  ;;  %v1067_v50 = vld [vmem:[%s1342_s7 + $0x38] sm:$0xff]   ;;  %v873_v51 = vld [vmem:[%s1341_s6] ss:$0 sm:$0xff] }
 0x124   :  { %v180_v56 = vadd.f32 %v179_v54, %v101_v48  ;;  %v223_v57 = vadd.f32 %v222_v55, %v109_v49  ;;  %v181_v58 = vpop.f32.mrb[2].mxu0  ;;  %v224_v59 = vpop.f32.mrb[2].mxu1 }
 0x125   :  { %v231_v60 = vmax.f32 %v221_v53, 0.0  ;;  %v182_v61 = vadd.f32 %v181_v58, %v97_v46  ;;  %v225_v62 = vadd.f32 %v224_v59, %v105_v47  ;;  %v183_v63 = vpop.f32.mrb[3].mxu0  ;;  %v226_v0 = vpop.f32.mrb[3].mxu1  ;;  %v229_v4 = vmax.f32 %v178_v52, 0.0 }
 0x126   :  { %v232_v1 = vmax.f32 %v223_v57, 0.0  ;;  %v184_v2 = vadd.f32 %v183_v63, %v101_v48  ;;  %v227_v3 = vadd.f32 %v226_v0, %v109_v49  ;;  %v230_v7 = vmax.f32 %v180_v56, 0.0  ;;  %v1066_v49 = vld [vmem:[%s1342_s7 + $0x30] sm:$0xff]  }
 0x127   :  { %v233_v5 = vmax.f32 %v182_v61, 0.0  ;;  %v235_v6 = vmax.f32 %v225_v62, 0.0 }
 0x128   :  { %v234_v8 = vmax.f32 %v184_v2, 0.0  ;;  %v236_v9 = vmax.f32 %v227_v3, 0.0 }
 0x129   :  { %v237_v10 = vpack.c.bf16 %v233_v5, %v229_v4  ;;  %v239_v11 = vpack.c.bf16 %v235_v6, %v231_v60 }
 0x12a   :  { %v238_v12 = vpack.c.bf16 %v234_v8, %v230_v7  ;;  %v240_v13 = vpack.c.bf16 %v236_v9, %v232_v1 }
 0x12c   :  { %536 = vmatprep.mubr.bf16.mxu0 %v238_v12  ;;  %577 = vmatprep.mubr.bf16.mxu1 %v240_v13 }
 0x12d   :  { %537 = vmatmul.mubr.bf16.vlgmr.msra.gmra.mrb[4].mxu0 %v237_v10  ;;  %578 = vmatmul.mubr.bf16.vlgmr.msra.gmra.mrb[4].mxu1 %v239_v11 }
 0x12e   :  { %963 = vmatpush3.bf16.msra.mxu0 %v1052_v14  ;;  %978 = vmatprep.mubr.msk.bf16.mxu0 %vm1172_vm1, %v1171_v38 }
 0x12f   :  { %964 = vmatprep.subr.bf16.mxu0 %v1171_v38  ;;  %998 = vmatprep.mubr.msk.bf16.mxu1 %vm1172_vm1, %v1171_v38 }
 0x130   :  { %983 = vmatpush3.bf16.msra.mxu1 %v1060_v22 }
 0x131   :  { %984 = vmatprep.subr.bf16.mxu1 %v1171_v38 }
 0x132   :  { %965 = vmatpush3.bf16.msra.mxu0 %v1053_v15 }
 0x133   :  { %966 = vmatprep.subr.bf16.mxu0 %v1171_v38 }
 0x134   :  { %985 = vmatpush3.bf16.msra.mxu1 %v1061_v23 }
 0x135   :  { %986 = vmatprep.subr.bf16.mxu1 %v1171_v38 }
 0x136   :  { %967 = vmatpush3.bf16.msra.mxu0 %v1054_v16 }
 0x137   :  { %968 = vmatprep.subr.bf16.mxu0 %v1171_v38 }
 0x138   :  { %987 = vmatpush3.bf16.msra.mxu1 %v1062_v24 }
 0x139   :  { %988 = vmatprep.subr.bf16.mxu1 %v1171_v38 }
 0x13a   :  { %969 = vmatpush3.bf16.msra.mxu0 %v1055_v17 }
 0x13b   :  { %970 = vmatprep.subr.bf16.mxu0 %v1171_v38 }
 0x13c   :  { %989 = vmatpush3.bf16.msra.mxu1 %v1063_v25 }
 0x13d   :  { %990 = vmatprep.subr.bf16.mxu1 %v1171_v38 }
 0x13e   :  { %971 = vmatpush3.bf16.msra.mxu0 %v1056_v18 }
 0x13f   :  { %972 = vmatprep.subr.bf16.mxu0 %v1171_v38 }
 0x140   :  { %991 = vmatpush3.bf16.msra.mxu1 %v1064_v26 }
 0x141   :  { %992 = vmatprep.subr.bf16.mxu1 %v1171_v38 }
 0x142   :  { %973 = vmatpush3.bf16.msra.mxu0 %v1057_v19 }
 0x143   :  { %974 = vmatprep.subr.bf16.mxu0 %v1171_v38 }
 0x144   :  { %993 = vmatpush3.bf16.msra.mxu1 %v1065_v27 }
 0x145   :  { %994 = vmatprep.subr.bf16.mxu1 %v1171_v38 }
 0x146   :  { %975 = vmatpush3.bf16.msra.mxu0 %v1058_v20 }
 0x147   :  { %976 = vmatprep.subr.bf16.mxu0 %v1171_v38 }
 0x148   :  { %995 = vmatpush3.bf16.msra.mxu1 %v1066_v49 }
 0x149   :  { %996 = vmatprep.subr.bf16.mxu1 %v1171_v38  ;;  %v882_v38 = vld [vmem:[%s1343_s8] ss:$0 sm:$0xff] }
 0x14a   :  { %977 = vmatpush3.bf16.msra.mxu0 %v1059_v21 }
 0x14c   :  { %997 = vmatpush3.bf16.msra.mxu1 %v1067_v50 }
 0x200   :  { %v916_v28 = vpop.f32.mrb[4].mxu0  ;;  %v938_v29 = vpop.f32.mrb[4].mxu1 }
 0x201   :  { %v917_v31 = vpop.f32.mrb[5].mxu0  ;;  %v939_v32 = vpop.f32.mrb[5].mxu1 }
 0x202   :  { %v918_v33 = vadd.f32 %v917_v31, %v916_v28  ;;  %v940_v34 = vadd.f32 %v939_v32, %v938_v29  ;;  %v919_v35 = vpop.f32.mrb[6].mxu0  ;;  %v941_v36 = vpop.f32.mrb[6].mxu1 }
 0x203   :  { %v920_v37 = vpop.f32.mrb[7].mxu0  ;;  %v942_v39 = vpop.f32.mrb[7].mxu1 }
 0x204   :  { %v539_v40 = vadd.f32 %v918_v33, %v840_v30  ;;  %v921_v41 = vadd.f32 %v920_v37, %v919_v35  ;;  %v943_v42 = vadd.f32 %v942_v39, %v941_v36 }
 0x206   :  { %v580_v43 = vadd.f32 %v940_v34, %v539_v40  ;;  %v542_v44 = vadd.f32 %v921_v41, %v840_v30 }
 0x208   :  { %v583_v45 = vadd.f32 %v943_v42, %v542_v44  ;;  %v586_v46 = vmax.f32 %v580_v43, 0.0 }
 0x20a   :  { %v587_v47 = vmax.f32 %v583_v45, 0.0 }
 0x20c   :  { %v588_v48 = vpack.c.bf16 %v587_v47, %v586_v46 }
 0x20e   :  { %979 = vmatmul.mubr.bf16.vlgmr.msra.gmra.mrb[8].mxu0 %v588_v48 }
 0x2e1   :  { %v694_v52 = vpop.f32.mrb[8].mxu0 }
 0x2e2   :  { %v695_v53 = vadd.f32 %v873_v51, %v694_v52  ;;  %v980_v54 = vpop.f32.mrb[9].mxu0 }
 0x2e3   :  { %v697_v55 = vpop.f32.mrb[10].mxu0 }
 0x2e4   :  { %v698_v56 = vadd.f32 %v873_v51, %v697_v55  ;;  %v981_v57 = vpop.f32.mrb[11].mxu0  ;;  %v701_v58 = vmax.f32 %v695_v53, 0.0 }
 0x2e6   :  { %v702_v59 = vmax.f32 %v698_v56, 0.0 }
 0x2e8   :  { %v703_v60 = vpack.c.bf16 %v702_v59, %v701_v58 }
 0x2ea   :  { %999 = vmatmul.mubr.bf16.vlgmr.msra.gmra.mrb[8].mxu1 %v703_v60 }
 0x3bd   :  { %v809_v61 = vpop.f32.mrb[8].mxu1 }
 0x3be   :  { %v1000_v62 = vpop.f32.mrb[9].mxu1  ;;  %v810_v0 = vadd.f32 %v882_v38, %v809_v61 }
 0x3bf   :  { %v812_v63 = vpop.f32.mrb[10].mxu1 }
 0x3c0   :  { %v813_v1 = vadd.f32 %v882_v38, %v812_v63  ;;  %v1001_v2 = vpop.f32.mrb[11].mxu1 }
 0x3c2   :  { %v898_v3 = vpack.c.bf16 %v813_v1, %v810_v0 }
 0x3c4   :  { %899 = vst [vmem:[%s1344_s9] sm:$0xff] %v898_v3  }
 0x3c5   :  { %830 = vsyncpa [#allocation3], 1 }
 0x3c6   :  { %831 = vsyncpa [#allocation5], 1 }
 0x3c7   :  { %832 = vsyncpa [#allocation8], 1 }

</bundles_post_ra>
